<compile_context>
chip_gen: v7x
topology: tpu7x:2x2x1
jax: 0.10.0
libtpu: 0.0.40
codegen_flags: <defaults>
</compile_context>

<pallas_src>
import jax
import jax.numpy as jnp
from jax.experimental import pallas as pl
from jax.experimental.pallas import tpu as pltpu


def _mixprop_kernel(x_ref, eff_ref, bias_ref, o_ref):
    """One lane tile: out = Eff @ x + bias  (single MXU matmul, f32 accum).

    x_ref    : (cin*N, tile)         VMEM  flattened input slab (lane-dense)
    eff_ref  : (c_out*N, cin*N)      VMEM  effective weights, resident
    bias_ref : (c_out*N, 1)          VMEM  per-row bias, resident
    o_ref    : (c_out*N, tile)       VMEM  output slab
    """
    acc = jnp.dot(eff_ref[...], x_ref[...], preferred_element_type=jnp.float32)
    o_ref[...] = (acc + bias_ref[...]).astype(o_ref.dtype)


def mixprop(x, adj, weight, bias, *, gdep, alpha, tile_l=4096,
            x_dtype=None, out_dtype=None):
    """MixProp forward.

    x       : (B, c_in, N, T)
    adj     : (N, N)
    weight  : (c_out, (gdep+1)*c_in, 1, 1)   torch Conv2d(1x1) weight layout
    bias    : (c_out,)
    x_dtype : optional compute/stream dtype for x and Eff (e.g. jnp.bfloat16
              to halve input HBM traffic); accumulation stays f32.
    out_dtype: optional output dtype (e.g. jnp.bfloat16).
    Returns (B, c_out, N, T).
    """
    B, cin, N, T = x.shape
    c_out = weight.shape[0]
    assert weight.shape[1] == (gdep + 1) * cin, "weight / gdep mismatch"
    out_dt = jnp.dtype(x.dtype if out_dtype is None else out_dtype)
    mm_dt = jnp.dtype(x.dtype if x_dtype is None else x_dtype)

    f32 = jnp.float32
    hp = jax.lax.Precision.HIGHEST

    # ---- tiny host-side graph/weight preprocessing (all O(N^2), done once) --
    adj_f = adj.astype(f32) + jnp.eye(N, dtype=f32)
    a_norm = adj_f / jnp.sum(adj_f, axis=1, keepdims=True)       # row-stochastic

    eye = jnp.eye(N, dtype=f32)
    p = eye
    p_list = [p]                                                 # P_0 = I
    for _ in range(gdep):
        p = alpha * eye + (1.0 - alpha) * jnp.dot(a_norm, p, precision=hp)
        p_list.append(p)
    p_stack = jnp.stack(p_list)                                  # (gdep+1, N, N)

    # Eff[o*N+v, c*N+w] = sum_hop W[o, hop*cin+c] * P_hop[v, w]
    w2 = weight[:, :, 0, 0].astype(f32).reshape(c_out, gdep + 1, cin)
    eff = jnp.einsum('ohc,hvw->ovcw', w2, p_stack, precision=hp)
    eff = eff.reshape(c_out * N, cin * N).astype(mm_dt)

    bias_col = jnp.repeat(bias.astype(f32), N)[:, None]          # (c_out*N, 1)

    # ---- data layout: (B, c_in, N, T) -> (c_in*N, L), L = B*T on lanes ------
    L = B * T
    xm = jnp.transpose(x, (1, 2, 0, 3)).reshape(cin * N, L).astype(mm_dt)

    # ---- lane-tile selection: minimal padding, VMEM-budgeted, >=2 steps -----
    lane = 128
    lanes = pl.cdiv(L, lane)                     # number of 128-lane columns
    x_item = mm_dt.itemsize
    o_item = out_dt.itemsize
    resident_bytes = int(eff.size) * eff.dtype.itemsize + int(bias_col.size) * 4

    # double-buffered in+out bytes per 128-lane column
    per_lane_col = 2 * lane * (cin * N * x_item + c_out * N * o_item)
    vmem_cap = 48 * 1024 * 1024                  # safe on v7x (64 MiB / TC)
    budget_lanes = max(1, (vmem_cap - resident_bytes - (2 << 20)) // per_lane_col)

    cap_lanes = max(1, min(tile_l // lane, budget_lanes))
    min_steps = 2 if lanes >= 2 else 1           # feed both v7x TensorCores
    steps = min(lanes, max(min_steps, pl.cdiv(lanes, cap_lanes)))
    tile = pl.cdiv(lanes, steps) * lane
    l_pad = tile * steps
    if l_pad != L:
        xm = jnp.pad(xm, ((0, 0), (0, l_pad - L)))

    vmem_need = (2 * tile * (cin * N * x_item + c_out * N * o_item)
                 + resident_bytes + (2 << 20))
    vmem_limit = int(min(max(vmem_need, 4 << 20), 56 * 1024 * 1024))

    flops = 2 * (c_out * N) * (cin * N) * l_pad
    bytes_accessed = (int(xm.size) * x_item + c_out * N * l_pad * o_item
                      + resident_bytes)

    out = pl.pallas_call(
        _mixprop_kernel,
        out_shape=jax.ShapeDtypeStruct((c_out * N, l_pad), out_dt),
        grid=(steps,),
        in_specs=[
            pl.BlockSpec((cin * N, tile), lambda i: (0, i)),        # x slab
            pl.BlockSpec((c_out * N, cin * N), lambda i: (0, 0)),   # Eff (resident)
            pl.BlockSpec((c_out * N, 1), lambda i: (0, 0)),         # bias (resident)
        ],
        out_specs=pl.BlockSpec((c_out * N, tile), lambda i: (0, i)),
        compiler_params=pltpu.CompilerParams(
            dimension_semantics=("parallel",),
            vmem_limit_bytes=vmem_limit,
        ),
        cost_estimate=pl.CostEstimate(flops=int(flops), transcendentals=0,
                                      bytes_accessed=int(bytes_accessed)),
    )(xm, eff, bias_col)

    # back to the PyTorch layout (B, c_out, N, T)
    out = out[:, :L].reshape(c_out, N, B, T)
    return jnp.transpose(out, (2, 0, 1, 3))


def mixprop_reference(x, adj, weight, bias, gdep, alpha):
    """Pure-JAX reference reproducing the PyTorch MixProp forward exactly."""
    N = adj.shape[0]
    adj = adj.astype(jnp.float32) + jnp.eye(N, dtype=jnp.float32)
    a = adj / adj.sum(1, keepdims=True)
    hp = jax.lax.Precision.HIGHEST
    x = x.astype(jnp.float32)
    h = x
    outs = [h]
    for _ in range(gdep):
        h = alpha * x + (1.0 - alpha) * jnp.einsum('bcwt,vw->bcvt', h, a,
                                                   precision=hp)
        outs.append(h)
    ho = jnp.concatenate(outs, axis=1)
    out = jnp.einsum('bkvt,ok->bovt', ho, weight[:, :, 0, 0], precision=hp)
    return out + bias[None, :, None, None]


if __name__ == "__main__":
    B, c_in, c_out, N, T = 2, 4, 8, 16, 16
    gdep, alpha = 3, 0.05

    key = jax.random.PRNGKey(0)
    kx, ka, kw, kb = jax.random.split(key, 4)
    x = jax.random.normal(kx, (B, c_in, N, T), jnp.float32)
    adj = jax.random.uniform(ka, (N, N), jnp.float32)      # non-negative adjacency
    weight = 0.1 * jax.random.normal(
        kw, (c_out, (gdep + 1) * c_in, 1, 1), jnp.float32)
    bias = 0.1 * jax.random.normal(kb, (c_out,), jnp.float32)

    ref = mixprop_reference(x, adj, weight, bias, gdep, alpha)

    # f32 path: semantics check against the reference.
    out = jax.block_until_ready(
        mixprop(x, adj, weight, bias, gdep=gdep, alpha=alpha))
    assert out.shape == (B, c_out, N, T), out.shape
    if not jnp.allclose(out, ref, rtol=1e-2, atol=1e-2):
        raise AssertionError("Pallas f32 output does not match reference")

    # bf16 in/out path (memory-bandwidth optimization; f32 accumulation).
    out_bf16 = jax.block_until_ready(
        mixprop(x, adj, weight, bias, gdep=gdep, alpha=alpha,
                x_dtype=jnp.bfloat16, out_dtype=jnp.bfloat16))
    assert out_bf16.shape == (B, c_out, N, T), out_bf16.shape
    if not jnp.allclose(out_bf16.astype(jnp.float32), ref, rtol=5e-2, atol=5e-2):
        raise AssertionError("Pallas bf16 output does not match reference")

    print("KERNEL_OK")
</pallas_src>

<mosaic_0001>
module attributes {stable_mosaic.version = 11 : i64} {
  func.func @_mixprop_kernel(%arg0: i32, %arg1: memref<64x128xf32, #tpu.memory_space<vmem>>, %arg2: memref<128x64xf32, #tpu.memory_space<vmem>>, %arg3: memref<128x1xf32, #tpu.memory_space<vmem>>, %arg4: memref<128x128xf32, #tpu.memory_space<vmem>>) attributes {dimension_semantics = [#tpu.dimension_semantics<parallel>], iteration_bounds = array<i64: 1>, scalar_prefetch = 0 : i64, scratch_operands = 0 : i64, tpu.core_type = #tpu.core_type<tc>, window_params = [{transform_indices = @transform_0, window_bounds = array<i64: 64, 128>}, {pipeline_mode = #tpu.pipeline_mode<synchronous>, transform_indices = @transform_1, window_bounds = array<i64: 128, 64>}, {pipeline_mode = #tpu.pipeline_mode<synchronous>, transform_indices = @transform_2, window_bounds = array<i64: 128, 1>}, {transform_indices = @transform_3, window_bounds = array<i64: 128, 128>}]} {
    %c0 = arith.constant 0 : index
    %c0_0 = arith.constant 0 : index
    %0 = vector.load %arg2[%c0, %c0_0] : memref<128x64xf32, #tpu.memory_space<vmem>>, vector<128x64xf32>
    %c0_1 = arith.constant 0 : index
    %c0_2 = arith.constant 0 : index
    %1 = vector.load %arg1[%c0_1, %c0_2] : memref<64x128xf32, #tpu.memory_space<vmem>>, vector<64x128xf32>
    %cst = arith.constant dense<0.000000e+00> : vector<128x128xf32>
    %2 = tpu.matmul %0, %1, %cst {dimension_numbers = #tpu.dot_dimension_numbers<[1], [0], [0], [1], [0, 0, 1, 1], [], []>} : vector<128x64xf32>, vector<64x128xf32>, vector<128x128xf32> -> vector<128x128xf32>
    %c0_3 = arith.constant 0 : index
    %c0_4 = arith.constant 0 : index
    %3 = vector.load %arg3[%c0_3, %c0_4] : memref<128x1xf32, #tpu.memory_space<vmem>>, vector<128x1xf32>
    %4 = vector.broadcast %3 : vector<128x1xf32> to vector<128x128xf32>
    %5 = arith.addf %2, %4 : vector<128x128xf32>
    %c0_5 = arith.constant 0 : index
    %c0_6 = arith.constant 0 : index
    %6 = vector.load %arg4[%c0_5, %c0_6] : memref<128x128xf32, #tpu.memory_space<vmem>>, vector<128x128xf32>
    tpu.vector_store %arg4[%c0_5, %c0_6], %5 {strides = array<i32>} : memref<128x128xf32, #tpu.memory_space<vmem>>, vector<128x128xf32>,
    return
  }
  func.func @transform_0(%arg0: i32) -> (i32, i32) {
    %c0_i32 = arith.constant 0 : i32
    %c0_i32_0 = arith.constant 0 : i32
    return %c0_i32, %arg0 : i32, i32
  }
  func.func @transform_1(%arg0: i32) -> (i32, i32) {
    %c0_i32 = arith.constant 0 : i32
    %c0_i32_0 = arith.constant 0 : i32
    %c0_i32_1 = arith.constant 0 : i32
    return %c0_i32, %c0_i32_0 : i32, i32
  }
  func.func @transform_2(%arg0: i32) -> (i32, i32) {
    %c0_i32 = arith.constant 0 : i32
    %c0_i32_0 = arith.constant 0 : i32
    %c0_i32_1 = arith.constant 0 : i32
    return %c0_i32, %c0_i32_0 : i32, i32
  }
  func.func @transform_3(%arg0: i32) -> (i32, i32) {
    %c0_i32 = arith.constant 0 : i32
    %c0_i32_0 = arith.constant 0 : i32
    return %c0_i32, %arg0 : i32, i32
  }
}

</mosaic_0001>

<bundles_post_ra>
// kernel: tpu_custom_call.1
= control target key start
LH: loop header
LB: loop body
LE: loop exit
PB: predicated region body
PF: predicated region fallthrough
CT: control target
= control target key end

     0   :  { %v495_v5 = vmov 0   ;;  %vm135_vm0 = vcmask 523264   ;;  %s667_s0 = inlined_call_operand.vmem [shape: f32[64,128], index: 0, kind: input, shape index: {}]   ;;  %s668_s1 = inlined_call_operand.vmem [shape: f32[128,64], index: 1, kind: input, shape index: {}]   ;;  %s669_s2 = inlined_call_operand.vmem [shape: f32[128,1], index: 2, kind: input, shape index: {}]   ;;  %s670_s3 = inlined_call_operand.hbm [shape: f32[128,128], index: 3, kind: output, shape index: {}]  }
   0x1   :  { %v31_v0 = vld [vmem:[%s667_s0] sm:$0xff]  ;;  %v32_v1 = vld [vmem:[%s667_s0 + $0x8] sm:$0xff]  ;;  %v33_v2 = vld [vmem:[%s667_s0 + $0x10] sm:$0xff]  ;;  %470 = vset.pattern.permute.xlu1 %v495_v5  ;;  %469 = vset.pattern.permute.xlu0 %v495_v5 }
   0x2   :  { %v441_v3 = vpack.c.bf16 %v32_v1, %v31_v0  ;;  %v34_v4 = vld [vmem:[%s667_s0 + $0x18] sm:$0xff]  ;;  %v35_v7 = vld [vmem:[%s667_s0 + $0x20] sm:$0xff]  ;;  %v36_v8 = vld [vmem:[%s667_s0 + $0x28] sm:$0xff] }
   0x3   :  { %v445_v6 = vpack.c.bf16 %v34_v4, %v33_v2  ;;  %v15_v9 = vld [vmem:[%s668_s1] sm:$0xff]  ;;  %v449_v11 = vpack.c.bf16 %v36_v8, %v35_v7  ;;  %v37_v12 = vld [vmem:[%s667_s0 + $0x30] sm:$0xff]  ;;  %v38_v13 = vld [vmem:[%s667_s0 + $0x38] sm:$0xff] }
   0x4   :  { %442 = vmatprep.subr.bf16.mxu0 %v441_v3  ;;  %457 = vmatprep.subr.bf16.mxu1 %v441_v3  ;;  %v23_v10 = vld [vmem:[%s668_s1 + $0x40] sm:$0xff]  ;;  %v41_v14 = vld [vmem:[%s669_s2 + $0x10] sm:$0xff]  ;;  %v453_v16 = vpack.c.bf16 %v38_v13, %v37_v12  ;;  %v42_v17 = vld [vmem:[%s669_s2 + $0x18] sm:$0xff] }
   0x5   :  { %444 = vmatpush3.bf16.msra.mxu0 %v441_v3  ;;  %461 = vmatpush3.bf16.msra.mxu1 %v441_v3  ;;  %v39_v15 = vld [vmem:[%s669_s2] sm:$0xff]  ;;  %v40_v18 = vld [vmem:[%s669_s2 + $0x8] sm:$0xff] }
   0x6   :  { %446 = vmatprep.subr.bf16.mxu0 %v445_v6  ;;  %458 = vmatprep.subr.bf16.mxu1 %v445_v6 }
   0x7   :  { %417 = vmatprep.mubr.msk.f32.mxu0 %vm135_vm0, %v15_v9  ;;  %429 = vmatprep.mubr.msk.f32.mxu1 %vm135_vm0, %v23_v10 }
   0x8   :  { %67 = vperm.xlu1 %470, %v41_v14   ;;  %57 = vperm.xlu0 %469, %v39_v15  }
   0x9   :  { %448 = vmatpush3.bf16.msra.mxu0 %v445_v6  ;;  %462 = vmatpush3.bf16.msra.mxu1 %v445_v6 }
   0xa   :  { %450 = vmatprep.subr.bf16.mxu0 %v449_v11  ;;  %459 = vmatprep.subr.bf16.mxu1 %v449_v11 }
   0xd   :  { %452 = vmatpush3.bf16.msra.mxu0 %v449_v11  ;;  %463 = vmatpush3.bf16.msra.mxu1 %v449_v11 }
   0xe   :  { %454 = vmatprep.subr.bf16.mxu0 %v453_v16  ;;  %460 = vmatprep.subr.bf16.mxu1 %v453_v16 }
   0xf   :  { %8 = vsyncpa [#allocation3], 0  ;;  %72 = vperm.xlu1 %470, %v42_v17   ;;  %62 = vperm.xlu0 %469, %v40_v18   ;;  %v44_v19 = vld [vmem:[%s669_s2 + $0x28] sm:$0xff]  ;;  %v43_v20 = vld [vmem:[%s669_s2 + $0x20] sm:$0xff] }
  0x10   :  { %v16_v21 = vld [vmem:[%s668_s1 + $0x8] sm:$0xff]  ;;  %v17_v23 = vld [vmem:[%s668_s1 + $0x10] sm:$0xff]  ;;  %v46_v25 = vld [vmem:[%s669_s2 + $0x38] sm:$0xff] }
  0x11   :  { %456 = vmatpush3.bf16.msra.mxu0 %v453_v16  ;;  %464 = vmatpush3.bf16.msra.mxu1 %v453_v16  ;;  %v24_v22 = vld [vmem:[%s668_s1 + $0x48] sm:$0xff]  ;;  %v25_v24 = vld [vmem:[%s668_s1 + $0x50] sm:$0xff]  ;;  %v18_v27 = vld [vmem:[%s668_s1 + $0x18] sm:$0xff] }
  0x12   :  { %v45_v26 = vld [vmem:[%s669_s2 + $0x30] sm:$0xff]  ;;  %v26_v28 = vld [vmem:[%s668_s1 + $0x58] sm:$0xff]  ;;  %v19_v29 = vld [vmem:[%s668_s1 + $0x20] sm:$0xff] }
  0x13   :  { %82 = vperm.xlu1 %470, %v44_v19   ;;  %77 = vperm.xlu0 %469, %v43_v20   ;;  %v27_v30 = vld [vmem:[%s668_s1 + $0x60] sm:$0xff]  ;;  %v48_v31 = vld [vmem:[%s669_s2 + $0x48] sm:$0xff]  ;;  %v21_v35 = vld [vmem:[%s668_s1 + $0x30] sm:$0xff] }
  0x14   :  { %418 = vmatmul.mubr.msk.f32.vlgmr.msra.gmra.mrb[0].mxu0 %vm135_vm0, %v16_v21  ;;  %430 = vmatmul.mubr.msk.f32.vlgmr.msra.gmra.mrb[0].mxu1 %vm135_vm0, %v24_v22  ;;  %v47_v32 = vld [vmem:[%s669_s2 + $0x40] sm:$0xff]  ;;  %v20_v33 = vld [vmem:[%s668_s1 + $0x28] sm:$0xff]  ;;  %v29_v36 = vld [vmem:[%s668_s1 + $0x70] sm:$0xff] }
  0x15   :  { %420 = vmatprep.mubr.msk.f32.mxu0 %vm135_vm0, %v17_v23  ;;  %432 = vmatprep.mubr.msk.f32.mxu1 %vm135_vm0, %v25_v24  ;;  %v28_v34 = vld [vmem:[%s668_s1 + $0x68] sm:$0xff]  ;;  %v50_v37 = vld [vmem:[%s669_s2 + $0x58] sm:$0xff]  ;;  %v49_v38 = vld [vmem:[%s669_s2 + $0x50] sm:$0xff] }
  0x16   :  { %v22_v39 = vld [vmem:[%s668_s1 + $0x38] sm:$0xff]  ;;  %v52_v41 = vld [vmem:[%s669_s2 + $0x68] sm:$0xff]  ;;  %v51_v42 = vld [vmem:[%s669_s2 + $0x60] sm:$0xff] }
  0x17   :  { %92 = vperm.xlu1 %470, %v46_v25   ;;  %87 = vperm.xlu0 %469, %v45_v26   ;;  %v30_v40 = vld [vmem:[%s668_s1 + $0x78] sm:$0xff]  ;;  %v53_v44 = vld [vmem:[%s669_s2 + $0x70] sm:$0xff] }
  0x18   :  { %421 = vmatmul.mubr.msk.f32.gmra.mrb[2].mxu0 %vm135_vm0, %v18_v27  ;;  %433 = vmatmul.mubr.msk.f32.gmra.mrb[2].mxu1 %vm135_vm0, %v26_v28  ;;  %v54_v43 = vld [vmem:[%s669_s2 + $0x78] sm:$0xff]  ;;  %s496_s2 = smov [#allocation2]  }
  0x19   :  { %423 = vmatprep.mubr.msk.f32.mxu0 %vm135_vm0, %v19_v29  ;;  %435 = vmatprep.mubr.msk.f32.mxu1 %vm135_vm0, %v27_v30  ;;  %s350_s8 = sshll.u32 %s496_s2, 4  ;;  %s351_s8 = int_to_ptr.vmem [resolvable:$true] %s350_s8 }
  0x1a   :  { %s471_s0 = scalar_lea.vmem %s351_s8, 2048  ;;  %p476_p1 = scmp.lt.s32.totalorder %s351_s8, %s351_s8 }
  0x1b   :  { %102 = vperm.xlu1 %470, %v48_v31   ;;  %97 = vperm.xlu0 %469, %v47_v32   ;;  %p472_p0 = scmp.ne.s32.totalorder %s351_s8, %s471_s0  ;;  %p477_p2 = scmp.lt.s32.totalorder %s471_s0, %s471_s0 }
  0x1c   :  { %424 = vmatmul.mubr.msk.f32.gmra.mrb[4].mxu0 %vm135_vm0, %v20_v33  ;;  %436 = vmatmul.mubr.msk.f32.gmra.mrb[4].mxu1 %vm135_vm0, %v28_v34 }
  0x1d   :  { %426 = vmatprep.mubr.msk.f32.mxu0 %vm135_vm0, %v21_v35  ;;  %438 = vmatprep.mubr.msk.f32.mxu1 %vm135_vm0, %v29_v36  ;;  %p478_p3 = por %p477_p2, %p476_p1 }
  0x1f   :  { %112 = vperm.xlu1 %470, %v50_v37   ;;  %107 = vperm.xlu0 %469, %v49_v38   ;;  %p479_p4 = pnand %p478_p3, %p472_p0 }
  0x20   :  { %427 = vmatmul.mubr.msk.f32.gmra.mrb[6].mxu0 %vm135_vm0, %v22_v39  ;;  %439 = vmatmul.mubr.msk.f32.gmra.mrb[6].mxu1 %vm135_vm0, %v30_v40 }
  0x23   :  { %122 = vperm.xlu1 %470, %v52_v41   ;;  %117 = vperm.xlu0 %469, %v51_v42  }
  0x27   :  { %132 = vperm.xlu1 %470, %v54_v43   ;;  %127 = vperm.xlu0 %469, %v53_v44  }
  0x87   :  { %v68_v45 = vpop.permute.xlu1 %67  ;;  %v58_v46 = vpop.permute.xlu0 %57 }
  0x8e   :  { %v73_v47 = vpop.permute.xlu1 %72  ;;  %v63_v48 = vpop.permute.xlu0 %62 }
  0x92   :  { %v83_v49 = vpop.permute.xlu1 %82  ;;  %v78_v50 = vpop.permute.xlu0 %77 }
  0x96   :  { %v93_v51 = vpop.permute.xlu1 %92  ;;  %v88_v52 = vpop.permute.xlu0 %87 }
  0x9a   :  { %v103_v53 = vpop.permute.xlu1 %102  ;;  %v98_v54 = vpop.permute.xlu0 %97 }
  0x9e   :  { %v113_v55 = vpop.permute.xlu1 %112  ;;  %v108_v56 = vpop.permute.xlu0 %107 }
  0xa2   :  { %v123_v1 = vpop.permute.xlu1 %122  ;;  %v118_v2 = vpop.permute.xlu0 %117 }
  0xa6   :  { %v133_v19 = vpop.permute.xlu1 %132  ;;  %v128_v20 = vpop.permute.xlu0 %127 }
  0xe7   :  { %v419_v57 = vpop.f32.mrb[0].mxu0  ;;  %v431_v58 = vpop.f32.mrb[0].mxu1 }
  0xe8   :  { %v256_v59 = vadd.f32 %v419_v57, %v63_v48  ;;  %v296_v60 = vadd.f32 %v431_v58, %v103_v53  ;;  %v250_v61 = vpop.f32.mrb[1].mxu0  ;;  %v290_v62 = vpop.f32.mrb[1].mxu1 }
  0xe9   :  { %v251_v63 = vadd.f32 %v250_v61, %v58_v46  ;;  %v291_v0 = vadd.f32 %v290_v62, %v98_v54 }
  0xea   :  { %330 = vst [vmem:[#allocation2 + $0x8] sm:$0xff] %v256_v59  ;;  %338 = vst [vmem:[#allocation2 + $0x48] sm:$0xff] %v296_v60 }
  0xeb   :  { %329 = vst [vmem:[#allocation2] sm:$0xff] %v251_v63  ;;  %337 = vst [vmem:[#allocation2 + $0x40] sm:$0xff] %v291_v0  ;;  %v422_v3 = vpop.f32.mrb[2].mxu0  ;;  %v434_v4 = vpop.f32.mrb[2].mxu1 }
  0xec   :  { %v266_v5 = vadd.f32 %v422_v3, %v73_v47  ;;  %v306_v6 = vadd.f32 %v434_v4, %v113_v55  ;;  %v260_v7 = vpop.f32.mrb[3].mxu0  ;;  %v300_v8 = vpop.f32.mrb[3].mxu1 }
  0xed   :  { %v261_v9 = vadd.f32 %v260_v7, %v68_v45  ;;  %v301_v10 = vadd.f32 %v300_v8, %v108_v56 }
  0xee   :  { %332 = vst [vmem:[#allocation2 + $0x18] sm:$0xff] %v266_v5  ;;  %340 = vst [vmem:[#allocation2 + $0x58] sm:$0xff] %v306_v6 }
  0xef   :  { %331 = vst [vmem:[#allocation2 + $0x10] sm:$0xff] %v261_v9  ;;  %339 = vst [vmem:[#allocation2 + $0x50] sm:$0xff] %v301_v10  ;;  %v425_v11 = vpop.f32.mrb[4].mxu0  ;;  %v437_v12 = vpop.f32.mrb[4].mxu1 }
  0xf0   :  { %v276_v13 = vadd.f32 %v425_v11, %v83_v49  ;;  %v316_v14 = vadd.f32 %v437_v12, %v123_v1  ;;  %v270_v15 = vpop.f32.mrb[5].mxu0  ;;  %v310_v16 = vpop.f32.mrb[5].mxu1 }
  0xf1   :  { %v271_v17 = vadd.f32 %v270_v15, %v78_v50  ;;  %v311_v18 = vadd.f32 %v310_v16, %v118_v2 }
  0xf2   :  { %334 = vst [vmem:[#allocation2 + $0x28] sm:$0xff] %v276_v13  ;;  %342 = vst [vmem:[#allocation2 + $0x68] sm:$0xff] %v316_v14 }
  0xf3   :  { %333 = vst [vmem:[#allocation2 + $0x20] sm:$0xff] %v271_v17  ;;  %341 = vst [vmem:[#allocation2 + $0x60] sm:$0xff] %v311_v18  ;;  %v428_v21 = vpop.f32.mrb[6].mxu0  ;;  %v440_v22 = vpop.f32.mrb[6].mxu1 }
  0xf4   :  { %v286_v23 = vadd.f32 %v428_v21, %v93_v51  ;;  %v326_v24 = vadd.f32 %v440_v22, %v133_v19  ;;  %v280_v25 = vpop.f32.mrb[7].mxu0  ;;  %v320_v26 = vpop.f32.mrb[7].mxu1 }
  0xf5   :  { %v281_v27 = vadd.f32 %v280_v25, %v88_v52  ;;  %v321_v28 = vadd.f32 %v320_v26, %v128_v20 }
  0xf6   :  { %336 = vst [vmem:[#allocation2 + $0x38] sm:$0xff] %v286_v23  ;;  %344 = vst [vmem:[#allocation2 + $0x78] sm:$0xff] %v326_v24 }
  0xf7   :  { %335 = vst [vmem:[#allocation2 + $0x30] sm:$0xff] %v281_v27  ;;  %343 = vst [vmem:[#allocation2 + $0x70] sm:$0xff] %v321_v28 }
  0xf8   :  { %482 = shalt.err (!%p479_p4)
}
  0xf9   :  { %s483_s11 = scalar_lea.hbm %s670_s3, 2048 }
  0xfa   :  { %p484_p5 = scmp.ne.s32.totalorder %s670_s3, %s483_s11  ;;  %p487_p6 = scmp.lt.u32.totalorder %s483_s11, %s670_s3 }
  0xfc   :  { %p489_p7 = pnand %p487_p6, %p484_p5 }
  0xfe   :  { %492 = shalt.err (!%p489_p7)
}
  0xff   :  { %s497_s16 = smov 128   ;;  %s498_s17 = smov 8  }
 0x100   :  { %356 = dma.vmem_to_hbm [thread:$0]  %s351_s8, 2048, %s670_s3, [#allocation3], %s497_s16, %s497_s16, %s498_s17  }
 0x101   :  { %493 = dma.done.wait [#allocation3], 2048  }
 0x102   :  { %494 = vsyncadd [#allocation3], 4294965248 }
 0x103   :  { %360 = vsyncpa [#allocation3], 1 }

</bundles_post_ra>
